<compile_context>
chip_gen: v6e
topology: v6e:2x2x1
jax: 0.10.0
libtpu: 0.0.40
codegen_flags: <defaults>
</compile_context>

<pallas_src>
import jax
import jax.numpy as jnp
from jax.experimental import pallas as pl
from jax.experimental.pallas import tpu as pltpu

block_size = 8      # T (sequence length) -- the tril buffer is (8, 8)
n_embd = 32         # C
head_size = 16      # chosen head size (module takes it as ctor arg)


def head_kernel(x_ref, wqkv_ref, o_ref):
    # x_ref:    (B, T, C)   full batch in VMEM
    # wqkv_ref: (C, 3H)     fused [q | k | v] projection weights
    # o_ref:    (B, T, H)
    B, T, C = x_ref.shape
    H = o_ref.shape[-1]

    x = x_ref[...]                                     # (B, T, C)

    # Fused projection: one MXU matmul on the batch-flattened rows.
    x2d = x.reshape(B * T, C)                          # (B*T, C)
    qkv = jnp.dot(x2d, wqkv_ref[...],
                  preferred_element_type=jnp.float32)  # (B*T, 3H)
    qkv = qkv.reshape(B, T, 3 * H)
    q = qkv[:, :, 0:H]                                 # (B, T, H)
    k = qkv[:, :, H:2 * H]
    v = qkv[:, :, 2 * H:3 * H]

    # Scaled attention scores: contraction over H directly (no k.T transpose).
    # NOTE: scale by C**-0.5 (embedding dim), exactly as in the PyTorch module.
    wei = jnp.einsum('bth,bsh->bts', q, k,
                     preferred_element_type=jnp.float32) * (C ** -0.5)  # (B,T,T)

    # Causal mask (tril == 0 -> -inf); batch-independent, computed once.
    row = jax.lax.broadcasted_iota(jnp.int32, (T, T), 0)
    col = jax.lax.broadcasted_iota(jnp.int32, (T, T), 1)
    wei = jnp.where((row >= col)[None, :, :], wei, -jnp.inf)

    # Numerically stable softmax along the last axis.
    wei = wei - jnp.max(wei, axis=-1, keepdims=True)
    e = jnp.exp(wei)
    s = jnp.sum(e, axis=-1, keepdims=True)
    r = pl.reciprocal(s, approx=True)      # EUP vrcp (free slot)
    r = r * (2.0 - s * r)                  # one Newton step -> full f32 accuracy
    p = e * r

    # Weighted aggregation of values, single (B, T, H) store.
    out = jnp.einsum('bts,bsh->bth', p, v,
                     preferred_element_type=jnp.float32)
    o_ref[...] = out.astype(o_ref.dtype)


def head_forward(x, wk, wq, wv):
    """x: (B, T, C) f32; wk/wq/wv: (C, H) f32.  Returns (B, T, H) f32."""
    B, T, C = x.shape
    H = wk.shape[1]
    # Fuse the three projection weights into one (C, 3H) matrix: [q | k | v].
    w_qkv = jnp.concatenate([wq, wk, wv], axis=1)
    return pl.pallas_call(
        head_kernel,
        out_shape=jax.ShapeDtypeStruct((B, T, H), x.dtype),
        grid_spec=pltpu.PrefetchScalarGridSpec(
            num_scalar_prefetch=0,
            grid=(1,),   # single invocation: whole problem fits trivially in VMEM
            in_specs=[
                pl.BlockSpec((B, T, C), lambda i: (0, 0, 0)),
                pl.BlockSpec((C, 3 * H), lambda i: (0, 0)),
            ],
            out_specs=pl.BlockSpec((B, T, H), lambda i: (0, 0, 0)),
        ),
        compiler_params=pltpu.CompilerParams(
            dimension_semantics=("arbitrary",),
        ),
    )(x, w_qkv)


def head_reference(x, wk, wq, wv):
    """Plain-JAX reference replicating the PyTorch forward exactly."""
    B, T, C = x.shape
    k = x @ wk
    q = x @ wq
    v = x @ wv
    wei = (q @ jnp.swapaxes(k, -2, -1)) * (C ** -0.5)
    tril = jnp.tril(jnp.ones((block_size, block_size)))
    wei = jnp.where(tril == 0, -jnp.inf, wei)
    wei = jax.nn.softmax(wei, axis=-1)
    return wei @ v


if __name__ == "__main__":
    key = jax.random.PRNGKey(0)
    kx, kk, kq, kv = jax.random.split(key, 4)

    B, T, C, H = 2, block_size, n_embd, head_size

    x = jax.random.normal(kx, (B, T, C), dtype=jnp.float32)
    # Deterministic "nn.Linear(n_embd, head_size, bias=False)" weights,
    # stored transposed as (C, H) so the kernel does x @ W.
    scale = 1.0 / (C ** 0.5)
    wk = jax.random.uniform(kk, (C, H), jnp.float32, -scale, scale)
    wq = jax.random.uniform(kq, (C, H), jnp.float32, -scale, scale)
    wv = jax.random.uniform(kv, (C, H), jnp.float32, -scale, scale)

    out = head_forward(x, wk, wq, wv)
    out = jax.block_until_ready(out)

    ref = head_reference(x, wk, wq, wv)
    assert out.shape == (B, T, H)
    assert jnp.allclose(out, ref, atol=1e-5, rtol=1e-5)

    print("KERNEL_OK")
</pallas_src>

<mosaic_0001>
module attributes {stable_mosaic.version = 11 : i64} {
  func.func @head_kernel(%arg0: i32, %arg1: memref<2x8x32xf32, #tpu.memory_space<vmem>>, %arg2: memref<32x48xf32, #tpu.memory_space<vmem>>, %arg3: memref<2x8x16xf32, #tpu.memory_space<vmem>>) attributes {dimension_semantics = [#tpu.dimension_semantics<arbitrary>], iteration_bounds = array<i64: 1>, scalar_prefetch = 0 : i64, scratch_operands = 0 : i64, tpu.core_type = #tpu.core_type<tc>, window_params = [{pipeline_mode = #tpu.pipeline_mode<synchronous>, transform_indices = @transform_0, window_bounds = array<i64: 2, 8, 32>}, {pipeline_mode = #tpu.pipeline_mode<synchronous>, transform_indices = @transform_1, window_bounds = array<i64: 32, 48>}, {pipeline_mode = #tpu.pipeline_mode<synchronous>, transform_indices = @transform_2, window_bounds = array<i64: 2, 8, 16>}]} {
    %c0 = arith.constant 0 : index
    %c0_0 = arith.constant 0 : index
    %c0_1 = arith.constant 0 : index
    %0 = vector.load %arg1[%c0, %c0_0, %c0_1] : memref<2x8x32xf32, #tpu.memory_space<vmem>>, vector<2x8x32xf32>
    %1 = vector.shape_cast %0 : vector<2x8x32xf32> to vector<16x32xf32>
    %c0_2 = arith.constant 0 : index
    %c0_3 = arith.constant 0 : index
    %2 = vector.load %arg2[%c0_2, %c0_3] : memref<32x48xf32, #tpu.memory_space<vmem>>, vector<32x48xf32>
    %cst = arith.constant dense<0.000000e+00> : vector<16x48xf32>
    %3 = tpu.matmul %1, %2, %cst {dimension_numbers = #tpu.dot_dimension_numbers<[1], [0], [0], [1], [0, 0, 1, 1], [], []>} : vector<16x32xf32>, vector<32x48xf32>, vector<16x48xf32> -> vector<16x48xf32>
    %4 = vector.shape_cast %3 : vector<16x48xf32> to vector<2x8x48xf32>
    %5 = vector.extract_strided_slice %4 {offsets = [0, 0, 0], sizes = [2, 8, 16], strides = [1, 1, 1]} : vector<2x8x48xf32> to vector<2x8x16xf32>
    %6 = vector.extract_strided_slice %4 {offsets = [0, 0, 16], sizes = [2, 8, 16], strides = [1, 1, 1]} : vector<2x8x48xf32> to vector<2x8x16xf32>
    %7 = vector.extract_strided_slice %4 {offsets = [0, 0, 32], sizes = [2, 8, 16], strides = [1, 1, 1]} : vector<2x8x48xf32> to vector<2x8x16xf32>
    "tpu.trace_start"() <{level = 10 : i32, message = "bth,bsh->bts"}> : () -> ()
    %cst_4 = arith.constant dense<0.000000e+00> : vector<2x8x8xf32>
    %8 = tpu.matmul %5, %6, %cst_4 {dimension_numbers = #tpu.dot_dimension_numbers<[2], [2], [1], [1], [0, 0, 0, 1, 1, 1], [0], [0]>} : vector<2x8x16xf32>, vector<2x8x16xf32>, vector<2x8x8xf32> -> vector<2x8x8xf32>
    "tpu.trace_stop"() : () -> ()
    %cst_5 = arith.constant 0.176776692 : f32
    %9 = vector.broadcast %cst_5 : f32 to vector<2x8x8xf32>
    %10 = arith.mulf %8, %9 : vector<2x8x8xf32>
    %11 = tpu.iota {dimensions = array<i32: 0>} : vector<8x8xi32>
    %12 = tpu.iota {dimensions = array<i32: 1>} : vector<8x8xi32>
    %13 = arith.cmpi sge, %11, %12 : vector<8x8xi32>
    %14 = vector.shape_cast %13 : vector<8x8xi1> to vector<1x8x8xi1>
    %cst_6 = arith.constant 0xFF800000 : f32
    %15 = vector.shape_cast %14 : vector<1x8x8xi1> to vector<1x8x8xi1>
    %16 = vector.broadcast %15 : vector<1x8x8xi1> to vector<2x8x8xi1>
    %17 = vector.broadcast %cst_6 : f32 to vector<2x8x8xf32>
    %18 = arith.select %16, %10, %17 : vector<2x8x8xi1>, vector<2x8x8xf32>
    %cst_7 = arith.constant dense<0xFF800000> : vector<2x8xf32>
    %19 = vector.multi_reduction <maximumf>, %18, %cst_7 [2] : vector<2x8x8xf32> to vector<2x8xf32>
    %20 = vector.shape_cast %19 : vector<2x8xf32> to vector<2x8x1xf32>
    %21 = vector.broadcast %20 : vector<2x8x1xf32> to vector<2x8x8xf32>
    %22 = arith.subf %18, %21 : vector<2x8x8xf32>
    %23 = math.exp %22 : vector<2x8x8xf32>
    %cst_8 = arith.constant dense<0.000000e+00> : vector<2x8xf32>
    %24 = vector.multi_reduction <add>, %23, %cst_8 [2] : vector<2x8x8xf32> to vector<2x8xf32>
    %25 = vector.shape_cast %24 : vector<2x8xf32> to vector<2x8x1xf32>
    %26 = tpu.reciprocal %25 {approx = true} : vector<2x8x1xf32> -> vector<2x8x1xf32>
    %27 = arith.mulf %25, %26 : vector<2x8x1xf32>
    %cst_9 = arith.constant 2.000000e+00 : f32
    %28 = vector.broadcast %cst_9 : f32 to vector<2x8x1xf32>
    %29 = arith.subf %28, %27 : vector<2x8x1xf32>
    %30 = arith.mulf %26, %29 : vector<2x8x1xf32>
    %31 = vector.broadcast %30 : vector<2x8x1xf32> to vector<2x8x8xf32>
    %32 = arith.mulf %23, %31 : vector<2x8x8xf32>
    "tpu.trace_start"() <{level = 10 : i32, message = "bts,bsh->bth"}> : () -> ()
    %cst_10 = arith.constant dense<0.000000e+00> : vector<2x8x16xf32>
    %33 = tpu.matmul %32, %7, %cst_10 {dimension_numbers = #tpu.dot_dimension_numbers<[2], [1], [1], [2], [0, 0, 0, 1, 1, 2], [0], [0]>} : vector<2x8x8xf32>, vector<2x8x16xf32>, vector<2x8x16xf32> -> vector<2x8x16xf32>
    "tpu.trace_stop"() : () -> ()
    %c0_11 = arith.constant 0 : index
    %c0_12 = arith.constant 0 : index
    %c0_13 = arith.constant 0 : index
    %34 = vector.load %arg3[%c0_11, %c0_12, %c0_13] : memref<2x8x16xf32, #tpu.memory_space<vmem>>, vector<2x8x16xf32>
    tpu.vector_store %arg3[%c0_11, %c0_12, %c0_13], %33 {strides = array<i32>} : memref<2x8x16xf32, #tpu.memory_space<vmem>>, vector<2x8x16xf32>,
    return
  }
  func.func @transform_0(%arg0: i32) -> (i32, i32, i32) {
    %c0_i32 = arith.constant 0 : i32
    %c0_i32_0 = arith.constant 0 : i32
    %c0_i32_1 = arith.constant 0 : i32
    %c0_i32_2 = arith.constant 0 : i32
    return %c0_i32, %c0_i32_0, %c0_i32_1 : i32, i32, i32
  }
  func.func @transform_1(%arg0: i32) -> (i32, i32) {
    %c0_i32 = arith.constant 0 : i32
    %c0_i32_0 = arith.constant 0 : i32
    %c0_i32_1 = arith.constant 0 : i32
    return %c0_i32, %c0_i32_0 : i32, i32
  }
  func.func @transform_2(%arg0: i32) -> (i32, i32, i32) {
    %c0_i32 = arith.constant 0 : i32
    %c0_i32_0 = arith.constant 0 : i32
    %c0_i32_1 = arith.constant 0 : i32
    %c0_i32_2 = arith.constant 0 : i32
    return %c0_i32, %c0_i32_0, %c0_i32_1 : i32, i32, i32
  }
}

</mosaic_0001>

<bundles_post_ra>
// kernel: tpu_custom_call.1
= control target key start
LH: loop header
LB: loop body
LE: loop exit
PB: predicated region body
PF: predicated region fallthrough
CT: control target
= control target key end

     0   :  { %7 = vsyncpa [#allocation3], 0  ;;  %s691_s0 = inlined_call_operand.hbm [shape: f32[2,8,32], index: 0, kind: input, shape index: {}]   ;;  %s692_s1 = inlined_call_operand.hbm [shape: f32[32,48], index: 1, kind: input, shape index: {}]   ;;  %s693_s2 = inlined_call_operand.hbm [shape: f32[2,8,16], index: 2, kind: output, shape index: {}]  }
   0x1   :  { %8 = vsyncpa [#allocation6], 0 }
   0x2   :  { %9 = vsyncpa [#allocation4], 0  ;;  %s631_s9 = smov [#allocation2]  }
   0x3   :  { %s15_s10 = sshll.u32 %s631_s9, 4  ;;  %s16_s10 = int_to_ptr.vmem [resolvable:$true] %s15_s10 }
   0x4   :  { %s573_s11 = scalar_lea.vmem %s16_s10, 256  ;;  %p578_p1 = scmp.lt.s32.totalorder %s16_s10, %s16_s10 }
   0x5   :  { %p574_p0 = scmp.ne.s32.totalorder %s16_s10, %s573_s11  ;;  %p579_p2 = scmp.lt.s32.totalorder %s573_s11, %s573_s11 }
   0x7   :  { %p580_p3 = por %p579_p2, %p578_p1 }
   0x9   :  { %p581_p4 = pnand %p580_p3, %p574_p0 }
   0xb   :  { %584 = shalt.err (!%p581_p4)
}
   0xc   :  { %s632_s12 = smov 128   ;;  %s633_s13 = smov 8  }
   0xd   :  { %21 = dma.hbm_to_vmem [thread:$0]  %s691_s0, 256, %s16_s10, [#allocation3], %s632_s12, %s632_s12, %s633_s13  }
   0xe   :  { %s634_s16 = smov [#allocation5]  }
   0xf   :  { %s27_s17 = sshll.u32 %s634_s16, 4  ;;  %s28_s17 = int_to_ptr.vmem [resolvable:$true] %s27_s17 }
  0x10   :  { %s593_s18 = scalar_lea.vmem %s28_s17, 512  ;;  %p598_p6 = scmp.lt.s32.totalorder %s28_s17, %s28_s17 }
  0x11   :  { %p594_p5 = scmp.ne.s32.totalorder %s28_s17, %s593_s18  ;;  %p599_p7 = scmp.lt.s32.totalorder %s593_s18, %s593_s18 }
  0x13   :  { %p600_p8 = por %p599_p7, %p598_p6 }
  0x15   :  { %p601_p9 = pnand %p600_p8, %p594_p5 }
  0x17   :  { %604 = shalt.err (!%p601_p9)
}
  0x18   :  { %33 = dma.hbm_to_vmem [thread:$0]  %s692_s1, 512, %s28_s17, [#allocation6], %s632_s12, %s632_s12, %s633_s13  }
  0x19   :  { %625 = dma.done.wait [#allocation3], 256  }
  0x1a   :  { %626 = vsyncadd [#allocation3], 4294967040 }
  0x1b   :  { %627 = dma.done.wait [#allocation6], 512  }
  0x1c   :  { %628 = vsyncadd [#allocation6], 4294966784  ;;  %vm46_vm0 = vcmask 261120   ;;  %v45_v0 = vld [vmem:[#allocation5 + $0x18] sm:$0xff]  ;;  %v44_v1 = vld [vmem:[#allocation5 + $0x10] sm:$0xff]  ;;  %v635_v6 = vmov 0.0   ;;  %v285_v11 = vlaneseq }
  0x1d   :  { %517 = vmatprep.subr.mxu0 %v45_v0  ;;  %v40_v2 = vld [vmem:[#allocation2] sm:$0xff]  ;;  %v43_v3 = vld [vmem:[#allocation5 + $0x8] sm:$0xff]  ;;  %v42_v4 = vld [vmem:[#allocation5] sm:$0xff]  ;;  %528 = vmatprep.subr.mxu1 %v635_v6  ;;  %vm636_vm1 = vmmov 0   ;;  %s637_s0 = smov 112   ;;  %vm131_vm2 = vcmask 130048  }
  0x1e   :  { %518 = vmatpush3.msra.mxu0 %v45_v0  ;;  %525 = vmatprep.mubr.msk.f32.mxu0 %vm46_vm0, %v40_v2  ;;  %v41_v5 = vld [vmem:[#allocation2 + $0x8] sm:$0xff]  ;;  %v286_v12 = vshrl.u32 %v285_v11, 7  ;;  %v288_v13 = vand.u32 127, %v285_v11  ;;  %vm294_vm4 = vcmask 64512   ;;  %s638_s1 = smov 96   ;;  %s639_s21 = smov [#allocation7]  }
  0x1f   :  { %519 = vmatprep.subr.mxu0 %v44_v1  ;;  %530 = vmatprep.mubr.msk.f32.mxu1 %vm636_vm1, %v635_v6  ;;  %s482_s22 = sshll.u32 %s639_s21, 4  ;;  %s483_s22 = int_to_ptr.vmem [resolvable:$true] %s482_s22 }
  0x20   :  { %520 = vmatpush3.msra.mxu0 %v44_v1  ;;  %vm289_vm3 = vcmp.ge.s32.totalorder %v286_v12, %v288_v13  ;;  %s605_s23 = scalar_lea.vmem %s483_s22, 256  ;;  %p610_p11 = scmp.lt.s32.totalorder %s483_s22, %s483_s22 }
  0x21   :  { %521 = vmatprep.subr.mxu0 %v43_v3  ;;  %p606_p10 = scmp.ne.s32.totalorder %s483_s22, %s605_s23  ;;  %p611_p12 = scmp.lt.s32.totalorder %s605_s23, %s605_s23 }
  0x22   :  { %522 = vmatpush3.msra.mxu0 %v43_v3 }
  0x23   :  { %523 = vmatprep.subr.mxu0 %v42_v4  ;;  %p612_p13 = por %p611_p12, %p610_p11 }
  0x24   :  { %524 = vmatpush3.msra.mxu0 %v42_v4 }
  0x25   :  { %526 = vmatmul.mubr.msk.f32.vlgmr.msra.gmra.mxu0 %vm46_vm0, %v41_v5  ;;  %538 = vmatprep.subr.mxu0 %v635_v6  ;;  %p613_p0 = pnand %p612_p13, %p606_p10 }
  0x26   :  { %540 = vmatprep.mubr.msk.f32.mxu0 %vm636_vm1, %v635_v6 }
  0xe5   :  { %v527_v7 = vpop.f32.mrf.mxu0 }
  0xe7   :  { %v119_v8 = vpop.f32.mrf.mxu0 }
  0xe8   :  { %129 = vrot.lane.b32.xlu0 %v119_v8, %s637_s0 }
  0xec   :  { %207 = vrot.lane.b32.xlu0 %v527_v7, %s637_s0 }
 0x15a   :  { %v130_v9 = vpop.permute.xlu0 %129 }
 0x15b   :  { %529 = vmatpush3.xpose.msk.msra.mxu1 %vm131_vm2, %v130_v9 }
 0x15c   :  { %533 = vmatprep.subr.mxu1 %v635_v6 }
 0x15e   :  { %531 = vmatmul.mubr.msk.f32.vlgmr.msra.gmra.mxu1 %vm131_vm2, %v119_v8  ;;  %v208_v10 = vpop.permute.xlu0 %207 }
 0x15f   :  { %534 = vmatpush3.xpose.msk.msra.mxu1 %vm131_vm2, %v208_v10  ;;  %535 = vmatprep.mubr.msk.f32.mxu1 %vm636_vm1, %v635_v6 }
 0x160   :  { %543 = vmatprep.subr.mxu1 %v635_v6 }
 0x162   :  { %536 = vmatmul.mubr.msk.f32.vlgmr.msra.gmra.mxu1 %vm131_vm2, %v527_v7 }
 0x163   :  { %545 = vmatprep.mubr.msk.f32.mxu1 %vm636_vm1, %v635_v6 }
 0x21e   :  { %v202_v14 = vpop.f32.mrf.mxu1 }
 0x21f   :  { %v283_v15 = vmul.f32 0.17677669, %v202_v14 }
 0x220   :  { %v532_v16 = vpop.f32.mrf.mxu1 }
 0x221   :  { %v292_v17 = vsel %vm289_vm3, %v283_v15, -inf }
 0x222   :  { %v279_v18 = vpop.f32.mrf.mxu1  ;;  %v295_v19 = vsel %vm294_vm4, %v292_v17, -inf }
 0x223   :  { %v284_v20 = vmul.f32 0.17677669, %v279_v18  ;;  %296 = vmax.xlane.f32.xlu1 %v295_v19 }
 0x224   :  { %v537_v21 = vpop.f32.mrf.mxu1 }
 0x225   :  { %v293_v22 = vsel %vm289_vm3, %v284_v20, -inf }
 0x226   :  { %v298_v23 = vsel %vm294_vm4, %v293_v22, -inf }
 0x227   :  { %299 = vmax.xlane.f32.xlu1 %v298_v23 }
 0x238   :  { %323 = vrot.lane.b32.xlu1 %v119_v8, %s638_s1 }
 0x2ac   :  { %v297_v24 = vpop.xlane.xlu1 %296 }
 0x2ad   :  { %v301_v25 = vsub.f32 %v292_v17, %v297_v24 }
 0x2af   :  { %v303_v26 = vmul.f32 1.442695, %v301_v25 }
 0x2b0   :  { %v300_v27 = vpop.xlane.xlu1 %299 }
 0x2b1   :  { %557 = vpow2.f32 %v303_v26  ;;  %v302_v28 = vsub.f32 %v293_v22, %v300_v27 }
 0x2b3   :  { %v305_v29 = vmul.f32 1.442695, %v302_v28 }
 0x2b4   :  { %v324_v30 = vpop.permute.xlu1 %323 }
 0x2b5   :  { %559 = vpow2.f32 %v305_v29  ;;  %539 = vmatpush3.msra.mxu0 %v324_v30 }
 0x2be   :  { %v558_v31 = vpop.eup %557 }
 0x2bf   :  { %v307_v32 = vsel %vm294_vm4, %v558_v31, 0.0 }
 0x2c0   :  { %308 = vadd.xlane.f32.xlu0 %v307_v32 }
 0x2c2   :  { %v560_v33 = vpop.eup %559 }
 0x2c3   :  { %v310_v34 = vsel %vm294_vm4, %v560_v33, 0.0 }
 0x2c4   :  { %311 = vadd.xlane.f32.xlu1 %v310_v34 }
 0x2d5   :  { %399 = vrot.lane.b32.xlu1 %v527_v7, %s638_s1 }
 0x349   :  { %v309_v35 = vpop.xlane.xlu0 %308 }
 0x34a   :  { %561 = vrcp.f32 %v309_v35 }
 0x34d   :  { %v312_v36 = vpop.xlane.xlu1 %311 }
 0x34e   :  { %563 = vrcp.f32 %v312_v36 }
 0x351   :  { %v400_v37 = vpop.permute.xlu1 %399 }
 0x352   :  { %544 = vmatpush3.msra.mxu1 %v400_v37 }
 0x357   :  { %v562_v38 = vpop.eup %561 }
 0x358   :  { %v315_v39 = vmul.f32 %v562_v38, %v309_v35 }
 0x35a   :  { %v317_v40 = vsub.f32 2.0, %v315_v39 }
 0x35b   :  { %v564_v41 = vpop.eup %563 }
 0x35c   :  { %v319_v42 = vmul.f32 %v562_v38, %v317_v40  ;;  %v316_v43 = vmul.f32 %v564_v41, %v312_v36 }
 0x35e   :  { %v321_v44 = vmul.f32 %v558_v31, %v319_v42  ;;  %v318_v45 = vsub.f32 2.0, %v316_v43 }
 0x360   :  { %v320_v46 = vmul.f32 %v564_v41, %v318_v45  ;;  %541 = vmatmul.mubr.msk.f32.vlgmr.msra.gmra.mxu0 %vm294_vm4, %v321_v44 }
 0x362   :  { %v322_v47 = vmul.f32 %v560_v33, %v320_v46 }
 0x364   :  { %546 = vmatmul.mubr.msk.f32.vlgmr.msra.gmra.mxu1 %vm294_vm4, %v322_v47 }
 0x420   :  { %v395_v48 = vpop.f32.mrf.mxu0 }
 0x421   :  { %475 = vst.msk [vmem:[#allocation7] sm:$0xff] %vm131_vm2, %v395_v48 }
 0x422   :  { %v542_v49 = vpop.f32.mrf.mxu0 }
 0x424   :  { %v471_v50 = vpop.f32.mrf.mxu1 }
 0x425   :  { %476 = vst.msk [vmem:[#allocation7 + $0x8] sm:$0xff] %vm131_vm2, %v471_v50 }
 0x426   :  { %v547_v51 = vpop.f32.mrf.mxu1 }
 0x427   :  { %616 = shalt.err (!%p613_p0)
}
 0x428   :  { %488 = dma.vmem_to_hbm [thread:$0]  %s483_s22, 256, %s693_s2, [#allocation4], %s632_s12, %s632_s12, %s633_s13  }
 0x429   :  { %629 = dma.done.wait [#allocation4], 256  }
 0x42a   :  { %630 = vsyncadd [#allocation4], 4294967040 }
 0x42b   :  { %492 = vsyncpa [#allocation3], 1 }
 0x42c   :  { %493 = vsyncpa [#allocation6], 1 }
 0x42d   :  { %494 = vsyncpa [#allocation4], 1 }

</bundles_post_ra>
